<compile_context>
chip_gen: v7x
topology: tpu7x:2x2x1
jax: 0.10.0
libtpu: 0.0.40
codegen_flags: <defaults>
</compile_context>

<pallas_src>
import jax
import jax.numpy as jnp
from jax.experimental import pallas as pl
from jax.experimental.pallas import tpu as pltpu


def _vmem_capacity_bytes():
    """Best-effort VMEM capacity query; conservative (v7x = 64 MiB) fallback."""
    try:
        info = pltpu.get_tpu_info()
        for name in ("vmem_capacity_bytes", "vmem_bytes", "vmem_size_bytes"):
            v = getattr(info, name, None)
            if v:
                return int(v)
    except Exception:
        pass
    return 64 * 1024 * 1024


def _choose_block_lanes(B, itemsize, vmem_limit_bytes):
    """Largest multiple-of-128 lane width such that
    2 inputs x 2 buffers x (B, L) + 2 outputs x 2 buffers x (1, L) fits the budget."""
    block_budget = int(vmem_limit_bytes * 0.75)
    per_lane = 2 * 2 * B * itemsize + 2 * 2 * 4
    lanes = block_budget // max(per_lane, 1)
    return max(128, (lanes // 128) * 128)


def _partial_sums_kernel(pred_ref, gold_ref, abs_ref, sq_ref):
    # (B, L) lane-dense block of the flattened (B, T*F) arrays.
    d = pred_ref[...].astype(jnp.float32) - gold_ref[...].astype(jnp.float32)
    # Reduce over the batch (sublane) axis only; everything stays lane-local,
    # so garbage lanes in a ragged final block cannot contaminate valid lanes.
    abs_ref[...] = jnp.sum(jnp.abs(d), axis=0, keepdims=True)
    sq_ref[...] = jnp.sum(d * d, axis=0, keepdims=True)


def score_loss(pred, gold, raw=None, col_names=None, *, block_lanes=None):
    """Pallas implementation of SCORELoss.forward. `raw` / `col_names` are unused
    (same as the reference module)."""
    assert pred.shape == gold.shape and pred.ndim == 3
    B, T, F = pred.shape
    N = T * F

    itemsize = max(jnp.dtype(pred.dtype).itemsize, jnp.dtype(gold.dtype).itemsize)
    vmem_cap = _vmem_capacity_bytes()
    vmem_limit = max(16 * 1024 * 1024, min(int(vmem_cap * 0.85), 112 * 1024 * 1024))

    if block_lanes is None:
        L = _choose_block_lanes(B, itemsize, vmem_limit)
    else:
        L = max(128, (int(block_lanes) // 128) * 128)
    if L >= N:
        L = N                      # single full-extent block (always legal)

    nblocks = pl.cdiv(N, L)

    # Free metadata reshapes on the contiguous (B, T, F) layout (no transpose).
    pred_flat = pred.reshape(B, N)
    gold_flat = gold.reshape(B, N)

    abs_sums, sq_sums = pl.pallas_call(
        _partial_sums_kernel,
        out_shape=(
            jax.ShapeDtypeStruct((1, N), jnp.float32),
            jax.ShapeDtypeStruct((1, N), jnp.float32),
        ),
        grid_spec=pltpu.PrefetchScalarGridSpec(
            num_scalar_prefetch=0,
            grid=(nblocks,),
            in_specs=[
                pl.BlockSpec((B, L), lambda j: (0, j)),
                pl.BlockSpec((B, L), lambda j: (0, j)),
            ],
            out_specs=(
                pl.BlockSpec((1, L), lambda j: (0, j)),
                pl.BlockSpec((1, L), lambda j: (0, j)),
            ),
        ),
        compiler_params=pltpu.CompilerParams(
            # Every step writes its own output block -> fully parallel axis
            # (sharded across TensorCores on multi-TC chips, plain loop on 1 TC).
            dimension_semantics=("parallel",),
            vmem_limit_bytes=vmem_limit,
        ),
    )(pred_flat, gold_flat)

    # Tiny epilogue on T*F elements (plain XLA): per-t sums stay in f32 before
    # the final reduce, which also improves accumulation accuracy for large T.
    inv_n = 1.0 / float(B * F)
    mae_sum = jnp.sum(abs_sums) * inv_n                       # = sum_i mae_i
    per_t_sq = jnp.sum(sq_sums.reshape(T, F), axis=-1)        # (T,)
    rmse_sum = jnp.sum(jnp.sqrt(per_t_sq * inv_n))            # = sum_i rmse_i
    return (mae_sum + rmse_sum) * 0.5


def _score_loss_ref(pred, gold):
    # Pure-JAX reference mirroring the torch loop exactly.
    all_mae = 0.0
    all_rmse = 0.0
    for i in range(pred.shape[1]):
        d = pred[:, i, :].astype(jnp.float32) - gold[:, i, :].astype(jnp.float32)
        all_mae += jnp.mean(jnp.abs(d))
        all_rmse += jnp.sqrt(jnp.mean(d * d))
    return (all_mae + all_rmse) / 2.0


if __name__ == "__main__":
    key = jax.random.PRNGKey(0)
    k1, k2, k3, k4 = jax.random.split(key, 4)

    # Case 1: small shape consistent with the module (single full block).
    B, T, F = 2, 8, 16
    pred = jax.random.normal(k1, (B, T, F), dtype=jnp.float32)
    gold = jax.random.normal(k2, (B, T, F), dtype=jnp.float32)
    out = jax.block_until_ready(score_loss(pred, gold, raw=None, col_names=None))
    ref = jax.block_until_ready(_score_loss_ref(pred, gold))
    assert jnp.allclose(out, ref, rtol=1e-5, atol=1e-5), (out, ref)

    # Case 2: exercises multiple lane blocks and the ragged final block
    # (N = 20*24 = 480 -> 4 blocks of 128 lanes, last one partially valid).
    B2, T2, F2 = 4, 20, 24
    pred2 = jax.random.normal(k3, (B2, T2, F2), dtype=jnp.float32)
    gold2 = jax.random.normal(k4, (B2, T2, F2), dtype=jnp.float32)
    out2 = jax.block_until_ready(score_loss(pred2, gold2, block_lanes=128))
    ref2 = jax.block_until_ready(_score_loss_ref(pred2, gold2))
    assert jnp.allclose(out2, ref2, rtol=1e-5, atol=1e-5), (out2, ref2)

    print("KERNEL_OK")
</pallas_src>

<mosaic_0001>
module attributes {stable_mosaic.version = 11 : i64} {
  func.func @_partial_sums_kernel(%arg0: i32, %arg1: memref<2x128xf32, #tpu.memory_space<vmem>>, %arg2: memref<2x128xf32, #tpu.memory_space<vmem>>, %arg3: memref<1x128xf32, #tpu.memory_space<vmem>>, %arg4: memref<1x128xf32, #tpu.memory_space<vmem>>) attributes {dimension_semantics = [#tpu.dimension_semantics<parallel>], iteration_bounds = array<i64: 1>, scalar_prefetch = 0 : i64, scratch_operands = 0 : i64, tpu.core_type = #tpu.core_type<tc>, window_params = [{transform_indices = @transform_0, window_bounds = array<i64: 2, 128>}, {transform_indices = @transform_1, window_bounds = array<i64: 2, 128>}, {transform_indices = @transform_2, window_bounds = array<i64: 1, 128>}, {transform_indices = @transform_3, window_bounds = array<i64: 1, 128>}]} {
    %c0 = arith.constant 0 : index
    %c0_0 = arith.constant 0 : index
    %0 = vector.load %arg1[%c0, %c0_0] : memref<2x128xf32, #tpu.memory_space<vmem>>, vector<2x128xf32>
    %c0_1 = arith.constant 0 : index
    %c0_2 = arith.constant 0 : index
    %1 = vector.load %arg2[%c0_1, %c0_2] : memref<2x128xf32, #tpu.memory_space<vmem>>, vector<2x128xf32>
    %2 = arith.subf %0, %1 : vector<2x128xf32>
    %3 = math.absf %2 : vector<2x128xf32>
    %cst = arith.constant dense<0.000000e+00> : vector<128xf32>
    %4 = vector.multi_reduction <add>, %3, %cst [0] : vector<2x128xf32> to vector<128xf32>
    %5 = vector.shape_cast %4 : vector<128xf32> to vector<1x128xf32>
    %c0_3 = arith.constant 0 : index
    %c0_4 = arith.constant 0 : index
    %6 = vector.load %arg3[%c0_3, %c0_4] : memref<1x128xf32, #tpu.memory_space<vmem>>, vector<1x128xf32>
    tpu.vector_store %arg3[%c0_3, %c0_4], %5 {strides = array<i32>} : memref<1x128xf32, #tpu.memory_space<vmem>>, vector<1x128xf32>,
    %7 = arith.mulf %2, %2 : vector<2x128xf32>
    %cst_5 = arith.constant dense<0.000000e+00> : vector<128xf32>
    %8 = vector.multi_reduction <add>, %7, %cst_5 [0] : vector<2x128xf32> to vector<128xf32>
    %9 = vector.shape_cast %8 : vector<128xf32> to vector<1x128xf32>
    %c0_6 = arith.constant 0 : index
    %c0_7 = arith.constant 0 : index
    %10 = vector.load %arg4[%c0_6, %c0_7] : memref<1x128xf32, #tpu.memory_space<vmem>>, vector<1x128xf32>
    tpu.vector_store %arg4[%c0_6, %c0_7], %9 {strides = array<i32>} : memref<1x128xf32, #tpu.memory_space<vmem>>, vector<1x128xf32>,
    return
  }
  func.func @transform_0(%arg0: i32) -> (i32, i32) {
    %c0_i32 = arith.constant 0 : i32
    %c0_i32_0 = arith.constant 0 : i32
    return %c0_i32, %arg0 : i32, i32
  }
  func.func @transform_1(%arg0: i32) -> (i32, i32) {
    %c0_i32 = arith.constant 0 : i32
    %c0_i32_0 = arith.constant 0 : i32
    return %c0_i32, %arg0 : i32, i32
  }
  func.func @transform_2(%arg0: i32) -> (i32, i32) {
    %c0_i32 = arith.constant 0 : i32
    %c0_i32_0 = arith.constant 0 : i32
    return %c0_i32, %arg0 : i32, i32
  }
  func.func @transform_3(%arg0: i32) -> (i32, i32) {
    %c0_i32 = arith.constant 0 : i32
    %c0_i32_0 = arith.constant 0 : i32
    return %c0_i32, %arg0 : i32, i32
  }
}

</mosaic_0001>

<bundles_post_ra>
// kernel: tpu_custom_call.1
= control target key start
LH: loop header
LB: loop body
LE: loop exit
PB: predicated region body
PF: predicated region fallthrough
CT: control target
= control target key end

     0   :  { %9 = vsyncpa [#allocation3], 0  ;;  %s223_s0 = inlined_call_operand.hbm [shape: f32[2,128], index: 0, kind: input, shape index: {}]   ;;  %s224_s1 = inlined_call_operand.vmem [shape: f32[2,128], index: 1, kind: input, shape index: {}]   ;;  %s225_s2 = inlined_call_operand.hbm [shape: f32[1,128], index: 2, kind: output, shape index: {0}]   ;;  %s226_s3 = inlined_call_operand.hbm [shape: f32[1,128], index: 3, kind: output, shape index: {1}]  }
   0x1   :  { %10 = vsyncpa [#allocation4], 0 }
   0x2   :  { %11 = vsyncpa [#allocation7], 0  ;;  %s153_s12 = smov [#allocation2]   ;;  %s81_s16 = scalar_lea.hbm %s223_s0, 32 }
   0x3   :  { %s18_s13 = sshll.u32 %s153_s12, 4  ;;  %p82_p0 = scmp.ne.s32.totalorder %s223_s0, %s81_s16  ;;  %s19_s13 = int_to_ptr.vmem [resolvable:$true] %s18_s13 }
   0x4   :  { %p85_p1 = scmp.lt.u32.totalorder %s81_s16, %s223_s0 }
   0x6   :  { %p87_p2 = pnand %p85_p1, %p82_p0 }
   0x8   :  { %90 = shalt.err (!%p87_p2)
}
   0x9   :  { %s91_s21 = scalar_lea.vmem %s19_s13, 32  ;;  %p96_p4 = scmp.lt.s32.totalorder %s19_s13, %s19_s13 }
   0xa   :  { %p92_p3 = scmp.ne.s32.totalorder %s19_s13, %s91_s21  ;;  %p97_p5 = scmp.lt.s32.totalorder %s91_s21, %s91_s21 }
   0xc   :  { %p98_p6 = por %p97_p5, %p96_p4 }
   0xe   :  { %p99_p7 = pnand %p98_p6, %p92_p3 }
  0x10   :  { %102 = shalt.err (!%p99_p7)
}
  0x11   :  { %21 = dma.hbm_to_vmem [thread:$0]  %s223_s0, 32, %s19_s13, [#allocation3]  }
  0x12   :  { %147 = dma.done.wait [#allocation3], 32  }
  0x13   :  { %148 = vsyncadd [#allocation3], 4294967264  ;;  %v27_v0 = vld [vmem:[#allocation2] sm:$0x3]  ;;  %vm31_vm0 = vcmask 1041408   ;;  %s154_s0 = smov [#allocation5]  }
  0x14   :  { %v28_v1 = vld [vmem:[%s224_s1] sm:$0x3]  ;;  %s55_s26 = sshll.u32 %s154_s0, 4  ;;  %s155_s27 = smov [#allocation6]   ;;  %s56_s26 = int_to_ptr.vmem [resolvable:$true] %s55_s26 }
  0x15   :  { %v29_v2 = vsub.f32 %v27_v0, %v28_v1  ;;  %s65_s1 = sshll.u32 %s155_s27, 4  ;;  %s103_s28 = scalar_lea.vmem %s56_s26, 16  ;;  %s191_s1 = int_to_ptr.vmem [resolvable:$true] %s65_s1 }
  0x16   :  { %p104_p8 = scmp.ne.s32.totalorder %s56_s26, %s103_s28  ;;  %s107_s29 = scalar_lea.vmem %s56_s26, 32 }
  0x17   :  { %v30_v3 = vand.u32 2147483647, %v29_v2  ;;  %v40_v4 = vmul.f32 %v29_v2, %v29_v2  ;;  %p108_p9 = scmp.lt.s32.totalorder %s56_s26, %s56_s26  ;;  %p109_p10 = scmp.lt.s32.totalorder %s107_s29, %s103_s28 }
  0x19   :  { %v32_v5 = vsel %vm31_vm0, %v30_v3, 0.0  ;;  %v41_v6 = vsel %vm31_vm0, %v40_v4, 0.0  ;;  %p110_p11 = por %p109_p10, %p108_p9 }
  0x1a   :  { %v33_v7 = vrot.slane %v32_v5, 4  ;;  %v42_v8 = vrot.slane %v41_v6, 4 }
  0x1b   :  { %p111_p12 = pnand %p110_p11, %p104_p8 }
  0x1c   :  { %v34_v9 = vadd.f32 %v33_v7, %v32_v5  ;;  %v43_v10 = vadd.f32 %v42_v8, %v41_v6 }
  0x1e   :  { %v35_v11 = vrot.slane %v34_v9, 2  ;;  %v44_v12 = vrot.slane %v43_v10, 2 }
  0x20   :  { %v36_v13 = vadd.f32 %v35_v11, %v34_v9  ;;  %v45_v14 = vadd.f32 %v44_v12, %v43_v10 }
  0x22   :  { %v37_v15 = vrot.slane %v36_v13, 1  ;;  %v46_v16 = vrot.slane %v45_v14, 1 }
  0x24   :  { %v38_v17 = vadd.f32 %v37_v15, %v36_v13  ;;  %v47_v18 = vadd.f32 %v46_v16, %v45_v14 }
  0x26   :  { %39 = vst [vmem:[#allocation5] sm:$0x1] %v38_v17  ;;  %48 = vst [vmem:[#allocation6] sm:$0x1] %v47_v18 }
  0x27   :  { %114 = shalt.err (!%p111_p12)
}
  0x28   :  { %s115_s5 = scalar_lea.hbm %s225_s2, 16 }
  0x29   :  { %p116_p13 = scmp.ne.s32.totalorder %s225_s2, %s115_s5  ;;  %p119_p0 = scmp.lt.u32.totalorder %s115_s5, %s225_s2 }
  0x2b   :  { %p121_p1 = pnand %p119_p0, %p116_p13 }
  0x2d   :  { %124 = shalt.err (!%p121_p1)
}
  0x2e   :  { %58 = dma.vmem_to_hbm [thread:$0]  %s56_s26, 16, %s225_s2, [#allocation4]  }
  0x2f   :  { %s125_s12 = scalar_lea.vmem %s191_s1, 16  ;;  %s129_s13 = scalar_lea.vmem %s191_s1, 32 }
  0x30   :  { %p126_p2 = scmp.ne.s32.totalorder %s191_s1, %s125_s12  ;;  %p130_p3 = scmp.lt.s32.totalorder %s191_s1, %s191_s1 }
  0x31   :  { %p131_p4 = scmp.lt.s32.totalorder %s129_s13, %s125_s12 }
  0x33   :  { %p132_p5 = por %p131_p4, %p130_p3 }
  0x35   :  { %p133_p6 = pnand %p132_p5, %p126_p2 }
  0x37   :  { %136 = shalt.err (!%p133_p6)
}
  0x38   :  { %s137_s16 = scalar_lea.hbm %s226_s3, 16 }
  0x39   :  { %p138_p7 = scmp.ne.s32.totalorder %s226_s3, %s137_s16  ;;  %p141_p8 = scmp.lt.u32.totalorder %s137_s16, %s226_s3 }
  0x3b   :  { %p143_p9 = pnand %p141_p8, %p138_p7 }
  0x3d   :  { %146 = shalt.err (!%p143_p9)
}
  0x3e   :  { %68 = dma.vmem_to_hbm [thread:$0]  %s191_s1, 16, %s226_s3, [#allocation7]  }
  0x3f   :  { %149 = dma.done.wait [#allocation4], 16  }
  0x40   :  { %150 = vsyncadd [#allocation4], 4294967280 }
  0x41   :  { %151 = dma.done.wait [#allocation7], 16  }
  0x42   :  { %152 = vsyncadd [#allocation7], 4294967280 }
  0x43   :  { %75 = vsyncpa [#allocation3], 1 }
  0x44   :  { %76 = vsyncpa [#allocation4], 1 }
  0x45   :  { %77 = vsyncpa [#allocation7], 1 }

</bundles_post_ra>
